<compile_context>
chip_gen: v5e
topology: v5e:2x2
jax: 0.10.0
libtpu: 0.0.40
codegen_flags: <defaults>
</compile_context>

<pallas_src>
import functools

import jax
import jax.numpy as jnp
from jax import lax
from jax.experimental import pallas as pl
from jax.experimental.pallas import tpu as pltpu

BN_EPS = 1e-5
# Contract the minor dim of both operands: (H,D) x (TILE_N,D) -> (H,TILE_N).
_CONTRACT_LAST = (((1,), (1,)), ((), ()))


def _round_up(x, m):
    return ((x + m - 1) // m) * m


def _pick_tile(n):
    # Largest batch tile (multiple of 128, capped at 2048).  Prefer a tile that
    # divides N exactly so no pad copy of the inputs is needed at all.
    for t in (2048, 1024, 512):
        if n >= t and n % t == 0:
            return t
    return min(2048, _round_up(n, 128))


def _vmem_limit_bytes(d, h, tile_n):
    lane = max(_round_up(d, 128), 128)        # minor dim is lane-padded in VMEM
    tile_bytes = 4 * tile_n * lane            # one [TILE_N, D] f32 tile
    inter_bytes = 4 * tile_n * (h + lane) + 4 * h * 2 * 128
    weight_bytes = 4 * (2 * h * d + 8 * h + 2 * d + 8)
    est = 2 * 2 * tile_bytes + 2 * inter_bytes + weight_bytes + (4 << 20)
    return int(min(max(est, 16 << 20), 32 << 20))


# ---------------------------------------------------------------------------
# Pass 1: global BatchNorm statistics (sum and sum-of-squares over the batch).
# Activations are [H, TILE_N] (feature on sublanes, batch on lanes).
# ---------------------------------------------------------------------------
def _bn_stats_kernel(*refs, broadcast, n_valid, n_pad, tile_n, tiles_per_split):
    if broadcast:
        it_ref, w1i_ref, b1_ref, sum_ref, ssq_ref, sum_sc, ssq_sc = refs
    else:
        (u_ref, it_ref, w1u_ref, w1i_ref, b1_ref,
         sum_ref, ssq_ref, sum_sc, ssq_sc) = refs

    c = pl.program_id(0)            # parallel split (shards across v7x 2 TCs)
    t = pl.program_id(1)            # sequential tiles inside a split

    @pl.when(t == 0)
    def _():
        sum_sc[...] = jnp.zeros_like(sum_sc)
        ssq_sc[...] = jnp.zeros_like(ssq_sc)

    it = it_ref[...]                                           # [TILE_N, D]
    h = lax.dot_general(w1i_ref[...], it, _CONTRACT_LAST,
                        preferred_element_type=jnp.float32)    # [H, TILE_N]
    if not broadcast:
        h = h + lax.dot_general(w1u_ref[...], u_ref[...], _CONTRACT_LAST,
                                preferred_element_type=jnp.float32)
    h = h + b1_ref[...]                                        # + b1 ([H, 1])

    if n_valid != n_pad:  # static: mask padded batch columns out of the stats
        col = (lax.broadcasted_iota(jnp.int32, (1, tile_n), 1)
               + (c * tiles_per_split + t) * tile_n)
        h = jnp.where(col < n_valid, h, 0.0)

    # Lane-parallel accumulation: VPU adds on lane-aligned 128-wide chunks.
    # No per-tile cross-lane (XLU) reduce and no lane-width-1 stores.
    s_acc = sum_sc[...]
    q_acc = ssq_sc[...]
    for j in range(tile_n // 128):
        blk = h[:, j * 128:(j + 1) * 128]
        s_acc = s_acc + blk
        q_acc = q_acc + blk * blk
    sum_sc[...] = s_acc
    ssq_sc[...] = q_acc

    @pl.when(t == pl.num_programs(1) - 1)
    def _():
        sum_ref[...] = jnp.sum(sum_sc[...], axis=1, keepdims=True)[None]
        ssq_ref[...] = jnp.sum(ssq_sc[...], axis=1, keepdims=True)[None]


# ---------------------------------------------------------------------------
# Pass 2: (BN folded into W1/b1) + ReLU, Linear2 folded through the final
# layer into a weighted sublane reduce, product branch, lane-dense [1, TILE_N]
# output.
# ---------------------------------------------------------------------------
def _forward_kernel(*refs, broadcast):
    if broadcast:
        it_ref, w1i_ref, b_ref, w2_ref, wfp_ref, c_ref, out_ref = refs
    else:
        (u_ref, it_ref, w1u_ref, w1i_ref, b_ref, w2_ref, wfp_ref, c_ref,
         out_ref) = refs

    it = it_ref[...]                                           # [TILE_N, D]
    h = lax.dot_general(w1i_ref[...], it, _CONTRACT_LAST,
                        preferred_element_type=jnp.float32)    # [H, TILE_N]
    if broadcast:
        pv = it                           # user already folded into wfp weights
    else:
        u = u_ref[...]
        h = h + lax.dot_general(w1u_ref[...], u, _CONTRACT_LAST,
                                preferred_element_type=jnp.float32)
        pv = u * it                                            # [TILE_N, D]

    h = jnp.maximum(h + b_ref[...], 0.0)       # BN folded into weights; ReLU

    # Linear(H->F) and the final layer folded: sum_H relu(h) * w2_eff
    score = jnp.sum(h * w2_ref[...], axis=0, keepdims=True)    # [1, TILE_N]
    # Product branch: [1, D] x [TILE_N, D]^T -> lane-dense [1, TILE_N]
    score = score + lax.dot_general(wfp_ref[...], pv, _CONTRACT_LAST,
                                    preferred_element_type=jnp.float32)
    out_ref[...] = score + c_ref[...]          # + (wf_int . b2 + bf)


def hybrid_recommender(users, items, params, *, input_dtype=jnp.float32):
    """users: [Nu, D] with Nu == N or 1, items: [N, D].  Returns [N] scores.

    input_dtype=jnp.bfloat16 halves the HBM traffic of the user/item streams
    (recommended on v6e/v7x); statistics and accumulation stay in f32.
    """
    n, d = items.shape
    h_dim = params["w1u_t"].shape[0]
    broadcast = users.shape[0] == 1
    f32 = jnp.float32

    tile_n = _pick_tile(n)
    n_pad = _round_up(n, tile_n)
    num_tiles = n_pad // tile_n
    num_splits = 2 if num_tiles % 2 == 0 else 1   # v7x: both TCs share pass 1
    tiles_per_split = num_tiles // num_splits
    vmem_limit = _vmem_limit_bytes(d, h_dim, tile_n)

    w1u = params["w1u_t"].astype(f32)
    w1i = params["w1i_t"].astype(f32)
    b1 = params["b1"].astype(f32)
    g1, beta1 = params["g1"].astype(f32), params["beta1"].astype(f32)
    w2_t, b2 = params["w2_t"].astype(f32), params["b2"].astype(f32)
    wf_int = params["wf_int"].astype(f32)
    wf_prod = params["wf_prod"].astype(f32)
    bf = params["bf"].astype(f32)

    # --- wrapper-side algebraic folds (O(H*D)/O(F*H), independent of N) -----
    w2_eff = w2_t.T @ wf_int                               # [H, 1]
    c_bias = jnp.sum(wf_int * b2).reshape(1, 1) + bf       # [1, 1]
    if broadcast:
        u0 = users[0].astype(f32)[:, None]                 # [D, 1]
        b1_base = b1 + w1u @ u0        # single user folded into layer-1 bias
        wfp_row = (wf_prod * u0).T     # ... and into the product weights [1,D]
    else:
        b1_base = b1
        wfp_row = wf_prod.T                                # [1, D]

    # Inputs stay [N, D]; pad along N only when the tile does not divide N.
    items_in = items.astype(input_dtype)
    users_in = None if broadcast else users.astype(input_dtype)
    if n_pad != n:
        items_in = jnp.pad(items_in, ((0, n_pad - n), (0, 0)))
        if users_in is not None:
            users_in = jnp.pad(users_in, ((0, n_pad - n), (0, 0)))

    w1u_in = w1u.astype(input_dtype)
    w1i_in = w1i.astype(input_dtype)

    def full(a, n_grid_args):   # whole-array block, resident across the grid
        nd = a.ndim
        if n_grid_args == 1:
            return pl.BlockSpec(a.shape, lambda t, nd=nd: (0,) * nd)
        return pl.BlockSpec(a.shape, lambda c, t, nd=nd: (0,) * nd)

    # ---- pass 1: global batch statistics ----------------------------------
    tile1 = pl.BlockSpec((tile_n, d),
                         lambda c, t: (c * tiles_per_split + t, 0))
    if broadcast:
        p1_args = (items_in, w1i_in, b1_base)
        p1_specs = [tile1, full(w1i_in, 2), full(b1_base, 2)]
    else:
        p1_args = (users_in, items_in, w1u_in, w1i_in, b1_base)
        p1_specs = [tile1, tile1, full(w1u_in, 2), full(w1i_in, 2),
                    full(b1_base, 2)]

    sums, ssqs = pl.pallas_call(
        functools.partial(_bn_stats_kernel, broadcast=broadcast, n_valid=n,
                          n_pad=n_pad, tile_n=tile_n,
                          tiles_per_split=tiles_per_split),
        grid=(num_splits, tiles_per_split),
        in_specs=p1_specs,
        out_specs=[pl.BlockSpec((1, h_dim, 1), lambda c, t: (c, 0, 0)),
                   pl.BlockSpec((1, h_dim, 1), lambda c, t: (c, 0, 0))],
        out_shape=[jax.ShapeDtypeStruct((num_splits, h_dim, 1), f32),
                   jax.ShapeDtypeStruct((num_splits, h_dim, 1), f32)],
        scratch_shapes=[pltpu.VMEM((h_dim, 128), f32),
                        pltpu.VMEM((h_dim, 128), f32)],
        compiler_params=pltpu.CompilerParams(
            dimension_semantics=("parallel", "arbitrary"),
            vmem_limit_bytes=vmem_limit),
    )(*p1_args)

    count = jnp.float32(n)
    mean = jnp.sum(sums, axis=0) / count                           # [H, 1]
    # Biased (training-mode) variance; clamp tiny negative roundoff.
    # TODO(synk): use a shifted sum-of-squares if layer-1 activations can have
    # |mean| >> std (E[h^2]-E[h]^2 cancellation in f32).
    var = jnp.maximum(jnp.sum(ssqs, axis=0) / count - mean * mean, 0.0)
    inv_std = lax.rsqrt(var + BN_EPS)
    scale = g1 * inv_std                                           # [H, 1]
    shift = beta1 - mean * scale                                   # [H, 1]

    # Fold BN into the layer-1 weights / bias (tiny O(H*D) rescale).
    w1i_bn = (scale * w1i).astype(input_dtype)
    b_bn = scale * b1_base + shift
    wfp_in = wfp_row.astype(input_dtype)

    # ---- pass 2: fused forward + score -------------------------------------
    tile2 = pl.BlockSpec((tile_n, d), lambda t: (t, 0))
    if broadcast:
        p2_args = (items_in, w1i_bn, b_bn, w2_eff, wfp_in, c_bias)
        p2_specs = [tile2, full(w1i_bn, 1), full(b_bn, 1), full(w2_eff, 1),
                    full(wfp_in, 1), full(c_bias, 1)]
    else:
        w1u_bn = (scale * w1u).astype(input_dtype)
        p2_args = (users_in, items_in, w1u_bn, w1i_bn, b_bn, w2_eff, wfp_in,
                   c_bias)
        p2_specs = [tile2, tile2, full(w1u_bn, 1), full(w1i_bn, 1),
                    full(b_bn, 1), full(w2_eff, 1), full(wfp_in, 1),
                    full(c_bias, 1)]

    out = pl.pallas_call(
        functools.partial(_forward_kernel, broadcast=broadcast),
        grid=(num_tiles,),
        in_specs=p2_specs,
        out_specs=pl.BlockSpec((1, tile_n), lambda t: (0, t)),
        out_shape=jax.ShapeDtypeStruct((1, n_pad), f32),
        compiler_params=pltpu.CompilerParams(
            dimension_semantics=("parallel",),    # megacore / v7x 2-TC sharding
            vmem_limit_bytes=vmem_limit),
    )(*p2_args)

    return out[0, :n]


def init_params(key, input_size, hidden, final_size):
    """Deterministic synthetic parameters (kernel/transposed layout)."""
    k1, k2, k3, k4 = jax.random.split(key, 4)
    d, h, f = input_size, hidden, final_size
    # interaction_model layer 1: Linear(2D -> H), weight [H, 2D], bias = 0
    w1 = jax.random.normal(k1, (h, 2 * d), jnp.float32) * 0.1
    b1 = jnp.zeros((h, 1), jnp.float32)
    # BatchNorm1d(H): gamma = 1, beta = 0
    g1 = jnp.ones((h, 1), jnp.float32)
    beta1 = jnp.zeros((h, 1), jnp.float32)
    # interaction_model final: Linear(H -> F), weight [F, H], bias = 0
    w2 = jax.random.normal(k2, (f, h), jnp.float32) * 0.1
    b2 = jnp.zeros((f, 1), jnp.float32)
    # final_layer: Linear(F + D -> 1)
    wf = jax.random.normal(k3, (f + d, 1), jnp.float32) * 0.1
    bf = jax.random.normal(k4, (1, 1), jnp.float32) * 0.1
    return {
        "w1u_t": w1[:, :d], "w1i_t": w1[:, d:], "b1": b1,
        "g1": g1, "beta1": beta1,
        "w2_t": w2, "b2": b2,
        "wf_int": wf[:f], "wf_prod": wf[f:], "bf": bf,
    }


def reference(users, items, params):
    """Pure-JAX reference of the same forward pass ([N, feature] math)."""
    n = items.shape[0]
    if users.shape[0] == 1:
        users = jnp.broadcast_to(users, (n, users.shape[1]))
    x = jnp.concatenate([users, items], axis=-1)                      # [N, 2D]
    w1 = jnp.concatenate([params["w1u_t"], params["w1i_t"]], axis=1)  # [H, 2D]
    h = x @ w1.T + params["b1"][:, 0]
    mean = h.mean(axis=0, keepdims=True)
    var = ((h - mean) ** 2).mean(axis=0, keepdims=True)
    h = (h - mean) / jnp.sqrt(var + BN_EPS) * params["g1"][:, 0] \
        + params["beta1"][:, 0]
    h = jnp.maximum(h, 0.0)
    inter = h @ params["w2_t"].T + params["b2"][:, 0]
    prod = users * items
    wf = jnp.concatenate([params["wf_int"], params["wf_prod"]], axis=0)
    out = jnp.concatenate([inter, prod], axis=-1) @ wf + params["bf"][0]
    return out[:, 0]


if __name__ == "__main__":
    N, D, H, F = 8, 16, 32, 8   # batch, input_size, hidden, final_size

    key = jax.random.PRNGKey(0)
    ku, ki, kp = jax.random.split(key, 3)
    query_users = jax.random.normal(ku, (N, D), jnp.float32)
    query_items = jax.random.normal(ki, (N, D), jnp.float32)
    params = init_params(kp, input_size=D, hidden=H, final_size=F)

    run = jax.jit(hybrid_recommender)
    run_bf16 = jax.jit(functools.partial(hybrid_recommender,
                                         input_dtype=jnp.bfloat16))

    # per-user / per-item path
    scores = jax.block_until_ready(run(query_users, query_items, params))
    ref = jax.block_until_ready(reference(query_users, query_items, params))
    assert scores.shape == (N,)
    assert jnp.allclose(scores, ref, rtol=1e-3, atol=1e-3), (scores, ref)

    # single-user broadcast path (query_users.size(0) == 1 in the module)
    scores_b = jax.block_until_ready(run(query_users[:1], query_items, params))
    ref_b = jax.block_until_ready(reference(query_users[:1], query_items, params))
    assert jnp.allclose(scores_b, ref_b, rtol=1e-3, atol=1e-3), (scores_b, ref_b)

    # bf16 input-streaming variant (v6e/v7x HBM-traffic halving), loose tol
    scores16 = jax.block_until_ready(run_bf16(query_users, query_items, params))
    assert jnp.allclose(scores16, ref, rtol=5e-2, atol=5e-2), (scores16, ref)

    print("KERNEL_OK")
</pallas_src>

<mosaic_0001>
module attributes {stable_mosaic.version = 11 : i64} {
  func.func @_bn_stats_kernel(%arg0: i32, %arg1: i32, %arg2: memref<128x16xf32, #tpu.memory_space<vmem>>, %arg3: memref<128x16xf32, #tpu.memory_space<vmem>>, %arg4: memref<32x16xf32, #tpu.memory_space<vmem>>, %arg5: memref<32x16xf32, #tpu.memory_space<vmem>>, %arg6: memref<32x1xf32, #tpu.memory_space<vmem>>, %arg7: memref<1x32x1xf32, #tpu.memory_space<vmem>>, %arg8: memref<1x32x1xf32, #tpu.memory_space<vmem>>, %arg9: memref<32x128xf32, #tpu.memory_space<vmem>>, %arg10: memref<32x128xf32, #tpu.memory_space<vmem>>) attributes {dimension_semantics = [#tpu.dimension_semantics<parallel>, #tpu.dimension_semantics<arbitrary>], iteration_bounds = array<i64: 1, 1>, scalar_prefetch = 0 : i64, scratch_operands = 2 : i64, tpu.core_type = #tpu.core_type<tc>, window_params = [{transform_indices = @transform_0, window_bounds = array<i64: 128, 16>}, {transform_indices = @transform_1, window_bounds = array<i64: 128, 16>}, {pipeline_mode = #tpu.pipeline_mode<synchronous>, transform_indices = @transform_2, window_bounds = array<i64: 32, 16>}, {pipeline_mode = #tpu.pipeline_mode<synchronous>, transform_indices = @transform_3, window_bounds = array<i64: 32, 16>}, {pipeline_mode = #tpu.pipeline_mode<synchronous>, transform_indices = @transform_4, window_bounds = array<i64: 32, 1>}, {transform_indices = @transform_5, window_bounds = array<i64: 1, 32, 1>}, {transform_indices = @transform_6, window_bounds = array<i64: 1, 32, 1>}]} {
    %c0_i32 = arith.constant 0 : i32
    %0 = arith.cmpi eq, %arg1, %c0_i32 : i32
    %1 = arith.extui %0 : i1 to i32
    %c0_i32_0 = arith.constant 0 : i32
    %2 = arith.cmpi ne, %1, %c0_i32_0 : i32
    scf.if %2 {
      %cst_22 = arith.constant 0.000000e+00 : f32
      %35 = vector.broadcast %cst_22 : f32 to vector<32x128xf32>
      %c0_23 = arith.constant 0 : index
      %c0_24 = arith.constant 0 : index
      %36 = vector.load %arg9[%c0_23, %c0_24] : memref<32x128xf32, #tpu.memory_space<vmem>>, vector<32x128xf32>
      tpu.vector_store %arg9[%c0_23, %c0_24], %35 {strides = array<i32>} : memref<32x128xf32, #tpu.memory_space<vmem>>, vector<32x128xf32>,
      %cst_25 = arith.constant 0.000000e+00 : f32
      %37 = vector.broadcast %cst_25 : f32 to vector<32x128xf32>
      %c0_26 = arith.constant 0 : index
      %c0_27 = arith.constant 0 : index
      %38 = vector.load %arg10[%c0_26, %c0_27] : memref<32x128xf32, #tpu.memory_space<vmem>>, vector<32x128xf32>
      tpu.vector_store %arg10[%c0_26, %c0_27], %37 {strides = array<i32>} : memref<32x128xf32, #tpu.memory_space<vmem>>, vector<32x128xf32>,
    } else {
    }
    %c0 = arith.constant 0 : index
    %c0_1 = arith.constant 0 : index
    %3 = vector.load %arg3[%c0, %c0_1] : memref<128x16xf32, #tpu.memory_space<vmem>>, vector<128x16xf32>
    %c0_2 = arith.constant 0 : index
    %c0_3 = arith.constant 0 : index
    %4 = vector.load %arg5[%c0_2, %c0_3] : memref<32x16xf32, #tpu.memory_space<vmem>>, vector<32x16xf32>
    %cst = arith.constant dense<0.000000e+00> : vector<32x128xf32>
    %5 = tpu.matmul %4, %3, %cst {dimension_numbers = #tpu.dot_dimension_numbers<[1], [1], [0], [0], [0, 0, 1, 0], [], []>} : vector<32x16xf32>, vector<128x16xf32>, vector<32x128xf32> -> vector<32x128xf32>
    %c0_4 = arith.constant 0 : index
    %c0_5 = arith.constant 0 : index
    %6 = vector.load %arg4[%c0_4, %c0_5] : memref<32x16xf32, #tpu.memory_space<vmem>>, vector<32x16xf32>
    %c0_6 = arith.constant 0 : index
    %c0_7 = arith.constant 0 : index
    %7 = vector.load %arg2[%c0_6, %c0_7] : memref<128x16xf32, #tpu.memory_space<vmem>>, vector<128x16xf32>
    %cst_8 = arith.constant dense<0.000000e+00> : vector<32x128xf32>
    %8 = tpu.matmul %6, %7, %cst_8 {dimension_numbers = #tpu.dot_dimension_numbers<[1], [1], [0], [0], [0, 0, 1, 0], [], []>} : vector<32x16xf32>, vector<128x16xf32>, vector<32x128xf32> -> vector<32x128xf32>
    %9 = arith.addf %5, %8 : vector<32x128xf32>
    %c0_9 = arith.constant 0 : index
    %c0_10 = arith.constant 0 : index
    %10 = vector.load %arg6[%c0_9, %c0_10] : memref<32x1xf32, #tpu.memory_space<vmem>>, vector<32x1xf32>
    %11 = vector.broadcast %10 : vector<32x1xf32> to vector<32x128xf32>
    %12 = arith.addf %9, %11 : vector<32x128xf32>
    %13 = tpu.iota {dimensions = array<i32: 1>} : vector<1x128xi32>
    %c1_i32 = arith.constant 1 : i32
    %14 = arith.muli %arg0, %c1_i32 : i32
    %15 = arith.addi %14, %arg1 : i32
    %c128_i32 = arith.constant 128 : i32
    %16 = arith.muli %15, %c128_i32 : i32
    %17 = vector.broadcast %16 : i32 to vector<1x128xi32>
    %18 = arith.addi %13, %17 : vector<1x128xi32>
    %c8_i32 = arith.constant 8 : i32
    %19 = vector.broadcast %c8_i32 : i32 to vector<1x128xi32>
    %20 = arith.cmpi slt, %18, %19 : vector<1x128xi32>
    %cst_11 = arith.constant 0.000000e+00 : f32
    %21 = vector.shape_cast %20 : vector<1x128xi1> to vector<1x128xi1>
    %22 = vector.broadcast %21 : vector<1x128xi1> to vector<32x128xi1>
    %23 = vector.broadcast %cst_11 : f32 to vector<32x128xf32>
    %24 = arith.select %22, %12, %23 : vector<32x128xi1>, vector<32x128xf32>
    %c0_12 = arith.constant 0 : index
    %c0_13 = arith.constant 0 : index
    %25 = vector.load %arg9[%c0_12, %c0_13] : memref<32x128xf32, #tpu.memory_space<vmem>>, vector<32x128xf32>
    %c0_14 = arith.constant 0 : index
    %c0_15 = arith.constant 0 : index
    %26 = vector.load %arg10[%c0_14, %c0_15] : memref<32x128xf32, #tpu.memory_space<vmem>>, vector<32x128xf32>
    %27 = arith.addf %25, %24 : vector<32x128xf32>
    %28 = arith.mulf %24, %24 : vector<32x128xf32>
    %29 = arith.addf %26, %28 : vector<32x128xf32>
    %c0_16 = arith.constant 0 : index
    %c0_17 = arith.constant 0 : index
    %30 = vector.load %arg9[%c0_16, %c0_17] : memref<32x128xf32, #tpu.memory_space<vmem>>, vector<32x128xf32>
    tpu.vector_store %arg9[%c0_16, %c0_17], %27 {strides = array<i32>} : memref<32x128xf32, #tpu.memory_space<vmem>>, vector<32x128xf32>,
    %c0_18 = arith.constant 0 : index
    %c0_19 = arith.constant 0 : index
    %31 = vector.load %arg10[%c0_18, %c0_19] : memref<32x128xf32, #tpu.memory_space<vmem>>, vector<32x128xf32>
    tpu.vector_store %arg10[%c0_18, %c0_19], %29 {strides = array<i32>} : memref<32x128xf32, #tpu.memory_space<vmem>>, vector<32x128xf32>,
    %c0_i32_20 = arith.constant 0 : i32
    %32 = arith.cmpi eq, %arg1, %c0_i32_20 : i32
    %33 = arith.extui %32 : i1 to i32
    %c0_i32_21 = arith.constant 0 : i32
    %34 = arith.cmpi ne, %33, %c0_i32_21 : i32
    scf.if %34 {
      %c0_22 = arith.constant 0 : index
      %c0_23 = arith.constant 0 : index
      %35 = vector.load %arg9[%c0_22, %c0_23] : memref<32x128xf32, #tpu.memory_space<vmem>>, vector<32x128xf32>
      %cst_24 = arith.constant dense<0.000000e+00> : vector<32xf32>
      %36 = vector.multi_reduction <add>, %35, %cst_24 [1] : vector<32x128xf32> to vector<32xf32>
      %37 = vector.shape_cast %36 : vector<32xf32> to vector<32x1xf32>
      %38 = vector.shape_cast %37 : vector<32x1xf32> to vector<1x32x1xf32>
      %c0_25 = arith.constant 0 : index
      %c0_26 = arith.constant 0 : index
      %c0_27 = arith.constant 0 : index
      %39 = vector.load %arg7[%c0_25, %c0_26, %c0_27] : memref<1x32x1xf32, #tpu.memory_space<vmem>>, vector<1x32x1xf32>
      tpu.vector_store %arg7[%c0_25, %c0_26, %c0_27], %38 {strides = array<i32>} : memref<1x32x1xf32, #tpu.memory_space<vmem>>, vector<1x32x1xf32>,
      %c0_28 = arith.constant 0 : index
      %c0_29 = arith.constant 0 : index
      %40 = vector.load %arg10[%c0_28, %c0_29] : memref<32x128xf32, #tpu.memory_space<vmem>>, vector<32x128xf32>
      %cst_30 = arith.constant dense<0.000000e+00> : vector<32xf32>
      %41 = vector.multi_reduction <add>, %40, %cst_30 [1] : vector<32x128xf32> to vector<32xf32>
      %42 = vector.shape_cast %41 : vector<32xf32> to vector<32x1xf32>
      %43 = vector.shape_cast %42 : vector<32x1xf32> to vector<1x32x1xf32>
      %c0_31 = arith.constant 0 : index
      %c0_32 = arith.constant 0 : index
      %c0_33 = arith.constant 0 : index
      %44 = vector.load %arg8[%c0_31, %c0_32, %c0_33] : memref<1x32x1xf32, #tpu.memory_space<vmem>>, vector<1x32x1xf32>
      tpu.vector_store %arg8[%c0_31, %c0_32, %c0_33], %43 {strides = array<i32>} : memref<1x32x1xf32, #tpu.memory_space<vmem>>, vector<1x32x1xf32>,
    } else {
    }
    return
  }
  func.func @transform_0(%arg0: i32, %arg1: i32) -> (i32, i32) {
    %c1_i32 = arith.constant 1 : i32
    %0 = arith.muli %arg0, %c1_i32 : i32
    %1 = arith.addi %0, %arg1 : i32
    %c0_i32 = arith.constant 0 : i32
    %c0_i32_0 = arith.constant 0 : i32
    return %1, %c0_i32 : i32, i32
  }
  func.func @transform_1(%arg0: i32, %arg1: i32) -> (i32, i32) {
    %c1_i32 = arith.constant 1 : i32
    %0 = arith.muli %arg0, %c1_i32 : i32
    %1 = arith.addi %0, %arg1 : i32
    %c0_i32 = arith.constant 0 : i32
    %c0_i32_0 = arith.constant 0 : i32
    return %1, %c0_i32 : i32, i32
  }
  func.func @transform_2(%arg0: i32, %arg1: i32) -> (i32, i32) {
    %c0_i32 = arith.constant 0 : i32
    %c0_i32_0 = arith.constant 0 : i32
    %c0_i32_1 = arith.constant 0 : i32
    return %c0_i32, %c0_i32_0 : i32, i32
  }
  func.func @transform_3(%arg0: i32, %arg1: i32) -> (i32, i32) {
    %c0_i32 = arith.constant 0 : i32
    %c0_i32_0 = arith.constant 0 : i32
    %c0_i32_1 = arith.constant 0 : i32
    return %c0_i32, %c0_i32_0 : i32, i32
  }
  func.func @transform_4(%arg0: i32, %arg1: i32) -> (i32, i32) {
    %c0_i32 = arith.constant 0 : i32
    %c0_i32_0 = arith.constant 0 : i32
    %c0_i32_1 = arith.constant 0 : i32
    return %c0_i32, %c0_i32_0 : i32, i32
  }
  func.func @transform_5(%arg0: i32, %arg1: i32) -> (i32, i32, i32) {
    %c0_i32 = arith.constant 0 : i32
    %c0_i32_0 = arith.constant 0 : i32
    %c0_i32_1 = arith.constant 0 : i32
    return %arg0, %c0_i32, %c0_i32_0 : i32, i32, i32
  }
  func.func @transform_6(%arg0: i32, %arg1: i32) -> (i32, i32, i32) {
    %c0_i32 = arith.constant 0 : i32
    %c0_i32_0 = arith.constant 0 : i32
    %c0_i32_1 = arith.constant 0 : i32
    return %arg0, %c0_i32, %c0_i32_0 : i32, i32, i32
  }
}

module attributes {stable_mosaic.version = 11 : i64} {
  func.func @_forward_kernel(%arg0: i32, %arg1: memref<128x16xf32, #tpu.memory_space<vmem>>, %arg2: memref<128x16xf32, #tpu.memory_space<vmem>>, %arg3: memref<32x16xf32, #tpu.memory_space<vmem>>, %arg4: memref<32x16xf32, #tpu.memory_space<vmem>>, %arg5: memref<32x1xf32, #tpu.memory_space<vmem>>, %arg6: memref<32x1xf32, #tpu.memory_space<vmem>>, %arg7: memref<1x16xf32, #tpu.memory_space<vmem>>, %arg8: memref<1x1xf32, #tpu.memory_space<vmem>>, %arg9: memref<1x128xf32, #tpu.memory_space<vmem>>) attributes {dimension_semantics = [#tpu.dimension_semantics<parallel>], iteration_bounds = array<i64: 1>, scalar_prefetch = 0 : i64, scratch_operands = 0 : i64, tpu.core_type = #tpu.core_type<tc>, window_params = [{transform_indices = @transform_0, window_bounds = array<i64: 128, 16>}, {transform_indices = @transform_1, window_bounds = array<i64: 128, 16>}, {pipeline_mode = #tpu.pipeline_mode<synchronous>, transform_indices = @transform_2, window_bounds = array<i64: 32, 16>}, {pipeline_mode = #tpu.pipeline_mode<synchronous>, transform_indices = @transform_3, window_bounds = array<i64: 32, 16>}, {pipeline_mode = #tpu.pipeline_mode<synchronous>, transform_indices = @transform_4, window_bounds = array<i64: 32, 1>}, {pipeline_mode = #tpu.pipeline_mode<synchronous>, transform_indices = @transform_5, window_bounds = array<i64: 32, 1>}, {pipeline_mode = #tpu.pipeline_mode<synchronous>, transform_indices = @transform_6, window_bounds = array<i64: 1, 16>}, {pipeline_mode = #tpu.pipeline_mode<synchronous>, transform_indices = @transform_7, window_bounds = array<i64: 1, 1>}, {transform_indices = @transform_8, window_bounds = array<i64: 1, 128>}]} {
    %c0 = arith.constant 0 : index
    %c0_0 = arith.constant 0 : index
    %0 = vector.load %arg2[%c0, %c0_0] : memref<128x16xf32, #tpu.memory_space<vmem>>, vector<128x16xf32>
    %c0_1 = arith.constant 0 : index
    %c0_2 = arith.constant 0 : index
    %1 = vector.load %arg4[%c0_1, %c0_2] : memref<32x16xf32, #tpu.memory_space<vmem>>, vector<32x16xf32>
    %cst = arith.constant dense<0.000000e+00> : vector<32x128xf32>
    %2 = tpu.matmul %1, %0, %cst {dimension_numbers = #tpu.dot_dimension_numbers<[1], [1], [0], [0], [0, 0, 1, 0], [], []>} : vector<32x16xf32>, vector<128x16xf32>, vector<32x128xf32> -> vector<32x128xf32>
    %c0_3 = arith.constant 0 : index
    %c0_4 = arith.constant 0 : index
    %3 = vector.load %arg1[%c0_3, %c0_4] : memref<128x16xf32, #tpu.memory_space<vmem>>, vector<128x16xf32>
    %c0_5 = arith.constant 0 : index
    %c0_6 = arith.constant 0 : index
    %4 = vector.load %arg3[%c0_5, %c0_6] : memref<32x16xf32, #tpu.memory_space<vmem>>, vector<32x16xf32>
    %cst_7 = arith.constant dense<0.000000e+00> : vector<32x128xf32>
    %5 = tpu.matmul %4, %3, %cst_7 {dimension_numbers = #tpu.dot_dimension_numbers<[1], [1], [0], [0], [0, 0, 1, 0], [], []>} : vector<32x16xf32>, vector<128x16xf32>, vector<32x128xf32> -> vector<32x128xf32>
    %6 = arith.addf %2, %5 : vector<32x128xf32>
    %7 = arith.mulf %3, %0 : vector<128x16xf32>
    %c0_8 = arith.constant 0 : index
    %c0_9 = arith.constant 0 : index
    %8 = vector.load %arg5[%c0_8, %c0_9] : memref<32x1xf32, #tpu.memory_space<vmem>>, vector<32x1xf32>
    %9 = vector.broadcast %8 : vector<32x1xf32> to vector<32x128xf32>
    %10 = arith.addf %6, %9 : vector<32x128xf32>
    %cst_10 = arith.constant 0.000000e+00 : f32
    %11 = vector.broadcast %cst_10 : f32 to vector<32x128xf32>
    %12 = arith.maximumf %10, %11 : vector<32x128xf32>
    %c0_11 = arith.constant 0 : index
    %c0_12 = arith.constant 0 : index
    %13 = vector.load %arg6[%c0_11, %c0_12] : memref<32x1xf32, #tpu.memory_space<vmem>>, vector<32x1xf32>
    %14 = vector.broadcast %13 : vector<32x1xf32> to vector<32x128xf32>
    %15 = arith.mulf %12, %14 : vector<32x128xf32>
    %cst_13 = arith.constant dense<0.000000e+00> : vector<128xf32>
    %16 = vector.multi_reduction <add>, %15, %cst_13 [0] : vector<32x128xf32> to vector<128xf32>
    %17 = vector.shape_cast %16 : vector<128xf32> to vector<1x128xf32>
    %c0_14 = arith.constant 0 : index
    %c0_15 = arith.constant 0 : index
    %18 = vector.load %arg7[%c0_14, %c0_15] : memref<1x16xf32, #tpu.memory_space<vmem>>, vector<1x16xf32>
    %cst_16 = arith.constant dense<0.000000e+00> : vector<1x128xf32>
    %19 = tpu.matmul %18, %7, %cst_16 {dimension_numbers = #tpu.dot_dimension_numbers<[1], [1], [0], [0], [0, 0, 1, 0], [], []>} : vector<1x16xf32>, vector<128x16xf32>, vector<1x128xf32> -> vector<1x128xf32>
    %20 = arith.addf %17, %19 : vector<1x128xf32>
    %c0_17 = arith.constant 0 : index
    %c0_18 = arith.constant 0 : index
    %21 = vector.load %arg8[%c0_17, %c0_18] : memref<1x1xf32, #tpu.memory_space<vmem>>, vector<1x1xf32>
    %22 = vector.broadcast %21 : vector<1x1xf32> to vector<1x128xf32>
    %23 = arith.addf %20, %22 : vector<1x128xf32>
    %c0_19 = arith.constant 0 : index
    %c0_20 = arith.constant 0 : index
    %24 = vector.load %arg9[%c0_19, %c0_20] : memref<1x128xf32, #tpu.memory_space<vmem>>, vector<1x128xf32>
    tpu.vector_store %arg9[%c0_19, %c0_20], %23 {strides = array<i32>} : memref<1x128xf32, #tpu.memory_space<vmem>>, vector<1x128xf32>,
    return
  }
  func.func @transform_0(%arg0: i32) -> (i32, i32) {
    %c0_i32 = arith.constant 0 : i32
    %c0_i32_0 = arith.constant 0 : i32
    return %arg0, %c0_i32 : i32, i32
  }
  func.func @transform_1(%arg0: i32) -> (i32, i32) {
    %c0_i32 = arith.constant 0 : i32
    %c0_i32_0 = arith.constant 0 : i32
    return %arg0, %c0_i32 : i32, i32
  }
  func.func @transform_2(%arg0: i32) -> (i32, i32) {
    %c0_i32 = arith.constant 0 : i32
    %c0_i32_0 = arith.constant 0 : i32
    %c0_i32_1 = arith.constant 0 : i32
    return %c0_i32, %c0_i32_0 : i32, i32
  }
  func.func @transform_3(%arg0: i32) -> (i32, i32) {
    %c0_i32 = arith.constant 0 : i32
    %c0_i32_0 = arith.constant 0 : i32
    %c0_i32_1 = arith.constant 0 : i32
    return %c0_i32, %c0_i32_0 : i32, i32
  }
  func.func @transform_4(%arg0: i32) -> (i32, i32) {
    %c0_i32 = arith.constant 0 : i32
    %c0_i32_0 = arith.constant 0 : i32
    %c0_i32_1 = arith.constant 0 : i32
    return %c0_i32, %c0_i32_0 : i32, i32
  }
  func.func @transform_5(%arg0: i32) -> (i32, i32) {
    %c0_i32 = arith.constant 0 : i32
    %c0_i32_0 = arith.constant 0 : i32
    %c0_i32_1 = arith.constant 0 : i32
    return %c0_i32, %c0_i32_0 : i32, i32
  }
  func.func @transform_6(%arg0: i32) -> (i32, i32) {
    %c0_i32 = arith.constant 0 : i32
    %c0_i32_0 = arith.constant 0 : i32
    %c0_i32_1 = arith.constant 0 : i32
    return %c0_i32, %c0_i32_0 : i32, i32
  }
  func.func @transform_7(%arg0: i32) -> (i32, i32) {
    %c0_i32 = arith.constant 0 : i32
    %c0_i32_0 = arith.constant 0 : i32
    %c0_i32_1 = arith.constant 0 : i32
    return %c0_i32, %c0_i32_0 : i32, i32
  }
  func.func @transform_8(%arg0: i32) -> (i32, i32) {
    %c0_i32 = arith.constant 0 : i32
    %c0_i32_0 = arith.constant 0 : i32
    return %c0_i32, %arg0 : i32, i32
  }
}

</mosaic_0001>

<bundles_post_ra>
// kernel: hybrid_recommender.2
= control target key start
LH: loop header
LB: loop body
LE: loop exit
PB: predicated region body
PF: predicated region fallthrough
CT: control target
= control target key end

     0   :  { %vm118_vm0 = vcmask 130048   ;;  %v497_v21 = vmov 0   ;;  %v325_v45 = vlaneseq  ;;  %vm381_vm2 = vcmask 7168   ;;  %s773_s0 = inlined_call_operand.vmem [shape: f32[128,16], index: 0, kind: input, shape index: {}]   ;;  %s774_s1 = inlined_call_operand.vmem [shape: f32[128,16], index: 1, kind: input, shape index: {}]   ;;  %s775_s4 = inlined_call_operand.vmem [shape: f32[32,1], index: 4, kind: input, shape index: {}]   ;;  %s776_s2 = inlined_call_operand.vmem [shape: f32[32,16], index: 2, kind: input, shape index: {}]   ;;  %s777_s3 = inlined_call_operand.vmem [shape: f32[32,16], index: 3, kind: input, shape index: {}]   ;;  %s778_s5 = inlined_call_operand.vmem [shape: f32[1,32,1], index: 5, kind: output, shape index: {0}]   ;;  %s779_s6 = inlined_call_operand.vmem [shape: f32[1,32,1], index: 6, kind: output, shape index: {1}]  }
   0x1   :  { %v117_v0 = vld [vmem:[%s773_s0 + $0x78] sm:$0xff]  ;;  %v116_v2 = vld [vmem:[%s773_s0 + $0x70] sm:$0xff]  ;;  %v115_v4 = vld [vmem:[%s773_s0 + $0x68] sm:$0xff]  ;;  %495 = vset.pattern.permute.xlu0 %v497_v21  ;;  %496 = vset.pattern.permute.xlu1 %v497_v21 }
   0x2   :  { %v93_v1 = vld [vmem:[%s774_s1 + $0x78] sm:$0xff]  ;;  %422 = vmatpush.xpose.msk.msra.mxu0 %vm118_vm0, %v117_v0  ;;  %v92_v3 = vld [vmem:[%s774_s1 + $0x70] sm:$0xff]  ;;  %462 = vmatpush.xpose.msk.msra.mxu2 %vm118_vm0, %v117_v0  ;;  %v91_v5 = vld [vmem:[%s774_s1 + $0x68] sm:$0xff]  ;;  %v326_v46 = vand.u32 127, %v325_v45 }
   0x3   :  { %442 = vmatpush.xpose.msk.msra.mxu1 %vm118_vm0, %v93_v1  ;;  %478 = vmatpush.xpose.msk.msra.mxu3 %vm118_vm0, %v93_v1  ;;  %v114_v6 = vld [vmem:[%s773_s0 + $0x60] sm:$0xff]  ;;  %v113_v8 = vld [vmem:[%s773_s0 + $0x58] sm:$0xff]  ;;  %v112_v10 = vld [vmem:[%s773_s0 + $0x50] sm:$0xff] }
   0x4   :  { %v90_v7 = vld [vmem:[%s774_s1 + $0x60] sm:$0xff]  ;;  %v89_v9 = vld [vmem:[%s774_s1 + $0x58] sm:$0xff]  ;;  %v88_v11 = vld [vmem:[%s774_s1 + $0x50] sm:$0xff]  ;;  %vm331_vm1 = vcmp.lt.s32.totalorder %v326_v46, 8 }
   0x5   :  { %v111_v12 = vld [vmem:[%s773_s0 + $0x48] sm:$0xff]  ;;  %v110_v14 = vld [vmem:[%s773_s0 + $0x40] sm:$0xff]  ;;  %v109_v16 = vld [vmem:[%s773_s0 + $0x38] sm:$0xff] }
   0x6   :  { %423 = vmatpush.xpose.msk.msra.mxu0 %vm118_vm0, %v116_v2  ;;  %463 = vmatpush.xpose.msk.msra.mxu2 %vm118_vm0, %v116_v2  ;;  %v87_v13 = vld [vmem:[%s774_s1 + $0x48] sm:$0xff]  ;;  %v86_v15 = vld [vmem:[%s774_s1 + $0x40] sm:$0xff]  ;;  %v85_v17 = vld [vmem:[%s774_s1 + $0x38] sm:$0xff] }
   0x7   :  { %443 = vmatpush.xpose.msk.msra.mxu1 %vm118_vm0, %v92_v3  ;;  %479 = vmatpush.xpose.msk.msra.mxu3 %vm118_vm0, %v92_v3  ;;  %v297_v18 = vld [vmem:[%s775_s4] sm:$0xff]  ;;  %v108_v19 = vld [vmem:[%s773_s0 + $0x30] sm:$0xff]  ;;  %v107_v22 = vld [vmem:[%s773_s0 + $0x28] sm:$0xff] }
   0x8   :  { %v84_v20 = vld [vmem:[%s774_s1 + $0x30] sm:$0xff]  ;;  %303 = vperm.xlu0 %495, %v297_v18   ;;  %v83_v23 = vld [vmem:[%s774_s1 + $0x28] sm:$0xff]  ;;  %v106_v26 = vld [vmem:[%s773_s0 + $0x20] sm:$0xff] }
   0x9   :  { %v298_v24 = vld [vmem:[%s775_s4 + $0x8] sm:$0xff]  ;;  %v299_v25 = vld [vmem:[%s775_s4 + $0x10] sm:$0xff]  ;;  %v82_v27 = vld [vmem:[%s774_s1 + $0x20] sm:$0xff] }
   0xa   :  { %424 = vmatpush.xpose.msk.msra.mxu0 %vm118_vm0, %v115_v4  ;;  %464 = vmatpush.xpose.msk.msra.mxu2 %vm118_vm0, %v115_v4  ;;  %v105_v28 = vld [vmem:[%s773_s0 + $0x18] sm:$0xff]  ;;  %v104_v31 = vld [vmem:[%s773_s0 + $0x10] sm:$0xff]  ;;  %v103_v33 = vld [vmem:[%s773_s0 + $0x8] sm:$0xff] }
   0xb   :  { %444 = vmatpush.xpose.msk.msra.mxu1 %vm118_vm0, %v91_v5  ;;  %480 = vmatpush.xpose.msk.msra.mxu3 %vm118_vm0, %v91_v5  ;;  %v81_v29 = vld [vmem:[%s774_s1 + $0x18] sm:$0xff]  ;;  %v80_v32 = vld [vmem:[%s774_s1 + $0x10] sm:$0xff]  ;;  %v79_v34 = vld [vmem:[%s774_s1 + $0x8] sm:$0xff] }
   0xc   :  { %313 = vperm.xlu1 %496, %v299_v25   ;;  %v300_v30 = vld [vmem:[%s775_s4 + $0x18] sm:$0xff]  ;;  %v102_v35 = vld [vmem:[%s773_s0] sm:$0xff]  ;;  %v100_v39 = vld [vmem:[%s776_s2 + $0x10] sm:$0xff] }
   0xd   :  { %v78_v36 = vld [vmem:[%s774_s1] sm:$0xff]  ;;  %v96_v40 = vld [vmem:[%s777_s3 + $0x10] sm:$0xff]  ;;  %v99_v41 = vld [vmem:[%s776_s2 + $0x8] sm:$0xff] }
   0xe   :  { %425 = vmatpush.xpose.msk.msra.mxu0 %vm118_vm0, %v114_v6  ;;  %465 = vmatpush.xpose.msk.msra.mxu2 %vm118_vm0, %v114_v6  ;;  %v98_v37 = vld [vmem:[%s776_s2] sm:$0xff]  ;;  %v95_v42 = vld [vmem:[%s777_s3 + $0x8] sm:$0xff]  ;;  %v101_v43 = vld [vmem:[%s776_s2 + $0x18] sm:$0xff] }
   0xf   :  { %445 = vmatpush.xpose.msk.msra.mxu1 %vm118_vm0, %v90_v7  ;;  %481 = vmatpush.xpose.msk.msra.mxu3 %vm118_vm0, %v90_v7  ;;  %v94_v38 = vld [vmem:[%s777_s3] sm:$0xff]  ;;  %v97_v44 = vld [vmem:[%s777_s3 + $0x18] sm:$0xff] }
  0x10   :  { %308 = vperm.xlu0 %495, %v298_v24  }
  0x12   :  { %426 = vmatpush.xpose.msk.msra.mxu0 %vm118_vm0, %v113_v8  ;;  %466 = vmatpush.xpose.msk.msra.mxu2 %vm118_vm0, %v113_v8 }
  0x13   :  { %446 = vmatpush.xpose.msk.msra.mxu1 %vm118_vm0, %v89_v9  ;;  %482 = vmatpush.xpose.msk.msra.mxu3 %vm118_vm0, %v89_v9 }
  0x14   :  { %318 = vperm.xlu1 %496, %v300_v30  }
  0x16   :  { %427 = vmatpush.xpose.msk.msra.mxu0 %vm118_vm0, %v112_v10  ;;  %467 = vmatpush.xpose.msk.msra.mxu2 %vm118_vm0, %v112_v10 }
  0x17   :  { %447 = vmatpush.xpose.msk.msra.mxu1 %vm118_vm0, %v88_v11  ;;  %483 = vmatpush.xpose.msk.msra.mxu3 %vm118_vm0, %v88_v11 }
  0x1a   :  { %428 = vmatpush.xpose.msk.msra.mxu0 %vm118_vm0, %v111_v12  ;;  %468 = vmatpush.xpose.msk.msra.mxu2 %vm118_vm0, %v111_v12 }
  0x1b   :  { %448 = vmatpush.xpose.msk.msra.mxu1 %vm118_vm0, %v87_v13  ;;  %484 = vmatpush.xpose.msk.msra.mxu3 %vm118_vm0, %v87_v13 }
  0x1e   :  { %429 = vmatpush.xpose.msk.msra.mxu0 %vm118_vm0, %v110_v14  ;;  %469 = vmatpush.xpose.msk.msra.mxu2 %vm118_vm0, %v110_v14 }
  0x1f   :  { %449 = vmatpush.xpose.msk.msra.mxu1 %vm118_vm0, %v86_v15  ;;  %485 = vmatpush.xpose.msk.msra.mxu3 %vm118_vm0, %v86_v15 }
  0x22   :  { %430 = vmatpush.xpose.msk.msra.mxu0 %vm118_vm0, %v109_v16  ;;  %470 = vmatpush.xpose.msk.msra.mxu2 %vm118_vm0, %v109_v16 }
  0x23   :  { %450 = vmatpush.xpose.msk.msra.mxu1 %vm118_vm0, %v85_v17  ;;  %486 = vmatpush.xpose.msk.msra.mxu3 %vm118_vm0, %v85_v17 }
  0x26   :  { %431 = vmatpush.xpose.msk.msra.mxu0 %vm118_vm0, %v108_v19  ;;  %471 = vmatpush.xpose.msk.msra.mxu2 %vm118_vm0, %v108_v19 }
  0x27   :  { %451 = vmatpush.xpose.msk.msra.mxu1 %vm118_vm0, %v84_v20  ;;  %487 = vmatpush.xpose.msk.msra.mxu3 %vm118_vm0, %v84_v20 }
  0x2a   :  { %432 = vmatpush.xpose.msk.msra.mxu0 %vm118_vm0, %v107_v22  ;;  %472 = vmatpush.xpose.msk.msra.mxu2 %vm118_vm0, %v107_v22 }
  0x2b   :  { %452 = vmatpush.xpose.msk.msra.mxu1 %vm118_vm0, %v83_v23  ;;  %488 = vmatpush.xpose.msk.msra.mxu3 %vm118_vm0, %v83_v23 }
  0x2e   :  { %433 = vmatpush.xpose.msk.msra.mxu0 %vm118_vm0, %v106_v26  ;;  %473 = vmatpush.xpose.msk.msra.mxu2 %vm118_vm0, %v106_v26 }
  0x2f   :  { %453 = vmatpush.xpose.msk.msra.mxu1 %vm118_vm0, %v82_v27  ;;  %489 = vmatpush.xpose.msk.msra.mxu3 %vm118_vm0, %v82_v27 }
  0x32   :  { %434 = vmatpush.xpose.msk.msra.mxu0 %vm118_vm0, %v105_v28  ;;  %474 = vmatpush.xpose.msk.msra.mxu2 %vm118_vm0, %v105_v28 }
  0x33   :  { %454 = vmatpush.xpose.msk.msra.mxu1 %vm118_vm0, %v81_v29  ;;  %490 = vmatpush.xpose.msk.msra.mxu3 %vm118_vm0, %v81_v29 }
  0x36   :  { %435 = vmatpush.xpose.msk.msra.mxu0 %vm118_vm0, %v104_v31  ;;  %475 = vmatpush.xpose.msk.msra.mxu2 %vm118_vm0, %v104_v31 }
  0x37   :  { %455 = vmatpush.xpose.msk.msra.mxu1 %vm118_vm0, %v80_v32  ;;  %491 = vmatpush.xpose.msk.msra.mxu3 %vm118_vm0, %v80_v32 }
  0x3a   :  { %436 = vmatpush.xpose.msk.msra.mxu0 %vm118_vm0, %v103_v33  ;;  %476 = vmatpush.xpose.msk.msra.mxu2 %vm118_vm0, %v103_v33 }
  0x3b   :  { %456 = vmatpush.xpose.msk.msra.mxu1 %vm118_vm0, %v79_v34  ;;  %492 = vmatpush.xpose.msk.msra.mxu3 %vm118_vm0, %v79_v34 }
  0x3e   :  { %437 = vmatpush.xpose.msk.msra.mxu0 %vm118_vm0, %v102_v35  ;;  %477 = vmatpush.xpose.msk.msra.mxu2 %vm118_vm0, %v102_v35 }
  0x3f   :  { %457 = vmatpush.xpose.msk.msra.mxu1 %vm118_vm0, %v78_v36  ;;  %493 = vmatpush.xpose.msk.msra.mxu3 %vm118_vm0, %v78_v36 }
  0x41   :  { %438 = vmatmul.msk.f32.vlgmr.msra.gmra.mxu0 %vm118_vm0, %v98_v37  ;;  %440 = vmatmul.msk.f32.vlgmr.msra.gmra.mxu2 %vm118_vm0, %v100_v39 }
  0x42   :  { %458 = vmatmul.msk.f32.vlgmr.msra.gmra.mxu1 %vm118_vm0, %v94_v38  ;;  %460 = vmatmul.msk.f32.vlgmr.msra.gmra.mxu3 %vm118_vm0, %v96_v40 }
  0x49   :  { %439 = vmatmul.msk.f32.gmra.mxu0 %vm118_vm0, %v99_v41  ;;  %441 = vmatmul.msk.f32.gmra.mxu2 %vm118_vm0, %v101_v43 }
  0x4a   :  { %459 = vmatmul.msk.f32.gmra.mxu1 %vm118_vm0, %v95_v42  ;;  %461 = vmatmul.msk.f32.gmra.mxu3 %vm118_vm0, %v97_v44 }
  0x7a   :  { %v304_v47 = vpop.permute.xlu0 %303 }
  0x7e   :  { %v314_v52 = vpop.permute.xlu1 %313 }
  0x82   :  { %v309_v60 = vpop.permute.xlu0 %308 }
  0x86   :  { %v319_v1 = vpop.permute.xlu1 %318 }
  0xbe   :  { %v196_v48 = vpop.f32.mrf.mxu0 }
  0xbf   :  { %v285_v49 = vpop.f32.mrf.mxu1 }
  0xc0   :  { %v286_v50 = vadd.f32 %v285_v49, %v196_v48 }
  0xc2   :  { %v321_v51 = vadd.f32 %v304_v47, %v286_v50 }
  0xc4   :  { %v334_v53 = vsel %vm331_vm1, %v321_v51, 0.0  ;;  %v202_v54 = vpop.f32.mrf.mxu2 }
  0xc5   :  { %373 = vadd.xlane.f32.xlu2 %v334_v53  ;;  %v291_v55 = vpop.f32.mrf.mxu3  ;;  %v350_v6 = vmul.f32 %v334_v53, %v334_v53 }
  0xc6   :  { %v199_v56 = vpop.f32.mrf.mxu0  ;;  %v292_v58 = vadd.f32 %v291_v55, %v202_v54 }
  0xc7   :  { %v288_v57 = vpop.f32.mrf.mxu1 }
  0xc8   :  { %v289_v59 = vadd.f32 %v288_v57, %v199_v56  ;;  %v323_v61 = vadd.f32 %v314_v52, %v292_v58 }
  0xca   :  { %v322_v62 = vadd.f32 %v309_v60, %v289_v59  ;;  %v336_v63 = vsel %vm331_vm1, %v323_v61, 0.0 }
  0xcb   :  { %377 = vadd.xlane.f32.xlu0 %v336_v63  ;;  %v352_v9 = vmul.f32 %v336_v63, %v336_v63 }
  0xcc   :  { %v335_v0 = vsel %vm331_vm1, %v322_v62, 0.0  ;;  %v205_v2 = vpop.f32.mrf.mxu2 }
  0xcd   :  { %375 = vadd.xlane.f32.xlu2 %v335_v0  ;;  %v294_v3 = vpop.f32.mrf.mxu3  ;;  %v351_v8 = vmul.f32 %v335_v0, %v335_v0 }
  0xce   :  { %v295_v4 = vadd.f32 %v294_v3, %v205_v2 }
  0xd0   :  { %v324_v5 = vadd.f32 %v319_v1, %v295_v4 }
  0xd2   :  { %v337_v7 = vsel %vm331_vm1, %v324_v5, 0.0 }
  0xd3   :  { %379 = vadd.xlane.f32.xlu1 %v337_v7  ;;  %v353_v10 = vmul.f32 %v337_v7, %v337_v7 }
  0xd5   :  { %390 = vadd.xlane.f32.xlu2 %v350_v6 }
  0xdd   :  { %392 = vadd.xlane.f32.xlu2 %v351_v8 }
  0xe5   :  { %394 = vadd.xlane.f32.xlu2 %v352_v9 }
  0xed   :  { %396 = vadd.xlane.f32.xlu2 %v353_v10 }
 0x138   :  { %v374_v11 = vpop.xlane.xlu2 %373 }
 0x139   :  { %382 = vst.msk [vmem:[%s778_s5] sm:$0xff] %vm381_vm2, %v374_v11 }
 0x13e   :  { %v378_v12 = vpop.xlane.xlu0 %377 }
 0x13f   :  { %384 = vst.msk [vmem:[%s778_s5 + $0x10] sm:$0xff] %vm381_vm2, %v378_v12 }
 0x140   :  { %v376_v13 = vpop.xlane.xlu2 %375 }
 0x141   :  { %383 = vst.msk [vmem:[%s778_s5 + $0x8] sm:$0xff] %vm381_vm2, %v376_v13 }
 0x146   :  { %v380_v14 = vpop.xlane.xlu1 %379 }
 0x147   :  { %385 = vst.msk [vmem:[%s778_s5 + $0x18] sm:$0xff] %vm381_vm2, %v380_v14 }
 0x148   :  { %v391_v15 = vpop.xlane.xlu2 %390 }
 0x149   :  { %398 = vst.msk [vmem:[%s779_s6] sm:$0xff] %vm381_vm2, %v391_v15 }
 0x150   :  { %v393_v16 = vpop.xlane.xlu2 %392 }
 0x151   :  { %399 = vst.msk [vmem:[%s779_s6 + $0x8] sm:$0xff] %vm381_vm2, %v393_v16 }
 0x158   :  { %v395_v17 = vpop.xlane.xlu2 %394 }
 0x159   :  { %400 = vst.msk [vmem:[%s779_s6 + $0x10] sm:$0xff] %vm381_vm2, %v395_v17 }
 0x160   :  { %v397_v18 = vpop.xlane.xlu2 %396 }
 0x161   :  { %401 = vst.msk [vmem:[%s779_s6 + $0x18] sm:$0xff] %vm381_vm2, %v397_v18 }

// kernel: hybrid_recommender.3
= control target key start
LH: loop header
LB: loop body
LE: loop exit
PB: predicated region body
PF: predicated region fallthrough
CT: control target
= control target key end

     0   :  { %vm71_vm0 = vcmask 130048   ;;  %v498_v29 = vmov 0   ;;  %s770_s0 = inlined_call_operand.vmem [shape: f32[128,16], index: 0, kind: input, shape index: {}]   ;;  %s771_s1 = inlined_call_operand.vmem [shape: f32[128,16], index: 1, kind: input, shape index: {}]   ;;  %s772_s4 = inlined_call_operand.vmem [shape: f32[32,1], index: 4, kind: input, shape index: {}]   ;;  %s773_s5 = inlined_call_operand.vmem [shape: f32[32,1], index: 5, kind: input, shape index: {}]   ;;  %s774_s7 = inlined_call_operand.<no memory space> [shape: f32[1,1], index: 7, kind: input, shape index: {}]   ;;  %s775_s2 = inlined_call_operand.vmem [shape: f32[32,16], index: 2, kind: input, shape index: {}]   ;;  %s776_s3 = inlined_call_operand.vmem [shape: f32[32,16], index: 3, kind: input, shape index: {}]   ;;  %s777_s6 = inlined_call_operand.vmem [shape: f32[1,16], index: 6, kind: input, shape index: {}]   ;;  %s778_s8 = inlined_call_operand.vmem [shape: f32[1,128], index: 8, kind: output, shape index: {}]  }
   0x1   :  { %v66_v0 = vld [vmem:[%s770_s0 + $0x78] sm:$0xff]  ;;  %v65_v2 = vld [vmem:[%s770_s0 + $0x70] sm:$0xff]  ;;  %v64_v4 = vld [vmem:[%s770_s0 + $0x68] sm:$0xff]  ;;  %495 = vset.pattern.permute.xlu0 %v498_v29  ;;  %496 = vset.pattern.permute.xlu1 %v498_v29  ;;  %v13_v51 = vstv %s774_s7 }
   0x2   :  { %v46_v1 = vld [vmem:[%s771_s1 + $0x78] sm:$0xff]  ;;  %421 = vmatpush.xpose.msk.msra.mxu0 %vm71_vm0, %v66_v0  ;;  %478 = vmatpush.xpose.msk.msra.mxu3 %vm71_vm0, %v66_v0  ;;  %v45_v3 = vld [vmem:[%s771_s1 + $0x70] sm:$0xff]  ;;  %v44_v5 = vld [vmem:[%s771_s1 + $0x68] sm:$0xff]  ;;  %14 = vst [vmem:[#allocation2] sm:$0x1] %v13_v51 }
   0x3   :  { %441 = vmatpush.xpose.msk.msra.mxu1 %vm71_vm0, %v46_v1  ;;  %v265_v6 = vmul.f32 %v66_v0, %v46_v1  ;;  %v264_v7 = vmul.f32 %v65_v2, %v45_v3  ;;  %v63_v8 = vld [vmem:[%s770_s0 + $0x60] sm:$0xff]  ;;  %v263_v10 = vmul.f32 %v64_v4, %v44_v5  ;;  %v62_v11 = vld [vmem:[%s770_s0 + $0x58] sm:$0xff]  ;;  %v61_v14 = vld [vmem:[%s770_s0 + $0x50] sm:$0xff]  ;;  %497 = vset.pattern.permute.xlu2 %v498_v29 }
   0x4   :  { %v43_v9 = vld [vmem:[%s771_s1 + $0x60] sm:$0xff]  ;;  %v42_v12 = vld [vmem:[%s771_s1 + $0x58] sm:$0xff]  ;;  %v41_v15 = vld [vmem:[%s771_s1 + $0x50] sm:$0xff] }
   0x5   :  { %461 = vmatpush.xpose.msk.msra.mxu2 %vm71_vm0, %v265_v6  ;;  %v262_v13 = vmul.f32 %v63_v8, %v43_v9  ;;  %v261_v16 = vmul.f32 %v62_v11, %v42_v12  ;;  %v60_v17 = vld [vmem:[%s770_s0 + $0x48] sm:$0xff]  ;;  %v260_v19 = vmul.f32 %v61_v14, %v41_v15  ;;  %v59_v20 = vld [vmem:[%s770_s0 + $0x40] sm:$0xff]  ;;  %v58_v23 = vld [vmem:[%s770_s0 + $0x38] sm:$0xff] }
   0x6   :  { %422 = vmatpush.xpose.msk.msra.mxu0 %vm71_vm0, %v65_v2  ;;  %479 = vmatpush.xpose.msk.msra.mxu3 %vm71_vm0, %v65_v2  ;;  %v40_v18 = vld [vmem:[%s771_s1 + $0x48] sm:$0xff]  ;;  %v39_v21 = vld [vmem:[%s771_s1 + $0x40] sm:$0xff]  ;;  %v38_v24 = vld [vmem:[%s771_s1 + $0x38] sm:$0xff] }
   0x7   :  { %442 = vmatpush.xpose.msk.msra.mxu1 %vm71_vm0, %v45_v3  ;;  %v259_v22 = vmul.f32 %v60_v17, %v40_v18  ;;  %v266_v25 = vld [vmem:[%s772_s4] sm:$0xff]  ;;  %v258_v26 = vmul.f32 %v59_v20, %v39_v21  ;;  %v57_v27 = vld [vmem:[%s770_s0 + $0x30] sm:$0xff]  ;;  %v56_v30 = vld [vmem:[%s770_s0 + $0x28] sm:$0xff]  ;;  %v257_v32 = vmul.f32 %v58_v23, %v38_v24 }
   0x8   :  { %v37_v28 = vld [vmem:[%s771_s1 + $0x30] sm:$0xff]  ;;  %272 = vperm.xlu0 %495, %v266_v25   ;;  %v36_v31 = vld [vmem:[%s771_s1 + $0x28] sm:$0xff]  ;;  %v55_v35 = vld [vmem:[%s770_s0 + $0x20] sm:$0xff] }
   0x9   :  { %462 = vmatpush.xpose.msk.msra.mxu2 %vm71_vm0, %v264_v7  ;;  %v268_v33 = vld [vmem:[%s772_s4 + $0x10] sm:$0xff]  ;;  %v267_v34 = vld [vmem:[%s772_s4 + $0x8] sm:$0xff]  ;;  %v35_v36 = vld [vmem:[%s771_s1 + $0x20] sm:$0xff]  ;;  %v256_v37 = vmul.f32 %v57_v27, %v37_v28  ;;  %v255_v40 = vmul.f32 %v56_v30, %v36_v31 }
   0xa   :  { %423 = vmatpush.xpose.msk.msra.mxu0 %vm71_vm0, %v64_v4  ;;  %480 = vmatpush.xpose.msk.msra.mxu3 %vm71_vm0, %v64_v4  ;;  %v54_v38 = vld [vmem:[%s770_s0 + $0x18] sm:$0xff]  ;;  %v300_v42 = vld [vmem:[%s773_s5 + $0x10] sm:$0xff]  ;;  %v254_v45 = vmul.f32 %v55_v35, %v35_v36  ;;  %v52_v46 = vld [vmem:[%s770_s0 + $0x8] sm:$0xff] }
   0xb   :  { %443 = vmatpush.xpose.msk.msra.mxu1 %vm71_vm0, %v44_v5  ;;  %282 = vperm.xlu1 %496, %v268_v33   ;;  %v34_v39 = vld [vmem:[%s771_s1 + $0x18] sm:$0xff]  ;;  %v53_v43 = vld [vmem:[%s770_s0 + $0x10] sm:$0xff]  ;;  %v32_v47 = vld [vmem:[%s771_s1 + $0x8] sm:$0xff] }
   0xc   :  { %v269_v41 = vld [vmem:[%s772_s4 + $0x18] sm:$0xff]  ;;  %v33_v44 = vld [vmem:[%s771_s1 + $0x10] sm:$0xff]  ;;  %v253_v48 = vmul.f32 %v54_v38, %v34_v39  ;;  %v298_v50 = vld [vmem:[%s773_s5] sm:$0xff]  ;;  %v251_v58 = vmul.f32 %v52_v46, %v32_v47 }
   0xd   :  { %463 = vmatpush.xpose.msk.msra.mxu2 %vm71_vm0, %v263_v10  ;;  %v301_v49 = vld [vmem:[%s773_s5 + $0x18] sm:$0xff]  ;;  %v51_v52 = vld [vmem:[%s770_s0] sm:$0xff]  ;;  %v252_v54 = vmul.f32 %v53_v43, %v33_v44  ;;  %304 = vperm.xlu2 %497, %v298_v50   ;;  %v68_v57 = vld [vmem:[%s775_s2 + $0x8] sm:$0xff] }
   0xe   :  { %424 = vmatpush.xpose.msk.msra.mxu0 %vm71_vm0, %v63_v8  ;;  %481 = vmatpush.xpose.msk.msra.mxu3 %vm71_vm0, %v63_v8  ;;  %v31_v53 = vld [vmem:[%s771_s1] sm:$0xff]  ;;  %v299_v59 = vld [vmem:[%s773_s5 + $0x8] sm:$0xff]  ;;  %v69_v62 = vld [vmem:[%s775_s2 + $0x10] sm:$0xff] }
   0xf   :  { %444 = vmatpush.xpose.msk.msra.mxu1 %vm71_vm0, %v43_v9  ;;  %v67_v55 = vld [vmem:[%s775_s2] sm:$0xff]  ;;  %v250_v60 = vmul.f32 %v51_v52, %v31_v53  ;;  %v48_v61 = vld [vmem:[%s776_s3 + $0x8] sm:$0xff]  ;;  %v49_v1 = vld [vmem:[%s776_s3 + $0x10] sm:$0xff] }
  0x10   :  { %277 = vperm.xlu0 %495, %v267_v34   ;;  %v47_v56 = vld [vmem:[%s776_s3] sm:$0xff]  ;;  %v70_v2 = vld [vmem:[%s775_s2 + $0x18] sm:$0xff] }
  0x11   :  { %464 = vmatpush.xpose.msk.msra.mxu2 %vm71_vm0, %v262_v13  ;;  %v335_v63 = vld [vmem:[%s777_s6] sm:$0x1]  ;;  %v50_v3 = vld [vmem:[%s776_s3 + $0x18] sm:$0xff] }
  0x12   :  { %425 = vmatpush.xpose.msk.msra.mxu0 %vm71_vm0, %v62_v11  ;;  %482 = vmatpush.xpose.msk.msra.mxu3 %vm71_vm0, %v62_v11  ;;  %v408_v0 = vld [vmem:[#allocation2] sm:$0x1] }
  0x13   :  { %445 = vmatpush.xpose.msk.msra.mxu1 %vm71_vm0, %v42_v12  ;;  %287 = vperm.xlu1 %496, %v269_v41  }
  0x15   :  { %465 = vmatpush.xpose.msk.msra.mxu2 %vm71_vm0, %v261_v16  ;;  %309 = vperm.xlu2 %497, %v299_v59  }
  0x16   :  { %426 = vmatpush.xpose.msk.msra.mxu0 %vm71_vm0, %v61_v14  ;;  %483 = vmatpush.xpose.msk.msra.mxu3 %vm71_vm0, %v61_v14 }
  0x17   :  { %446 = vmatpush.xpose.msk.msra.mxu1 %vm71_vm0, %v41_v15 }
  0x18   :  { %314 = vperm.xlu0 %495, %v300_v42  }
  0x19   :  { %466 = vmatpush.xpose.msk.msra.mxu2 %vm71_vm0, %v260_v19 }
  0x1a   :  { %427 = vmatpush.xpose.msk.msra.mxu0 %vm71_vm0, %v60_v17  ;;  %484 = vmatpush.xpose.msk.msra.mxu3 %vm71_vm0, %v60_v17 }
  0x1b   :  { %447 = vmatpush.xpose.msk.msra.mxu1 %vm71_vm0, %v40_v18  ;;  %319 = vperm.xlu1 %496, %v301_v49  }
  0x1d   :  { %467 = vmatpush.xpose.msk.msra.mxu2 %vm71_vm0, %v259_v22  ;;  %411 = vperm.xlu2 %497, %v408_v0  }
  0x1e   :  { %428 = vmatpush.xpose.msk.msra.mxu0 %vm71_vm0, %v59_v20  ;;  %485 = vmatpush.xpose.msk.msra.mxu3 %vm71_vm0, %v59_v20 }
  0x1f   :  { %448 = vmatpush.xpose.msk.msra.mxu1 %vm71_vm0, %v39_v21 }
  0x21   :  { %468 = vmatpush.xpose.msk.msra.mxu2 %vm71_vm0, %v258_v26 }
  0x22   :  { %429 = vmatpush.xpose.msk.msra.mxu0 %vm71_vm0, %v58_v23  ;;  %486 = vmatpush.xpose.msk.msra.mxu3 %vm71_vm0, %v58_v23 }
  0x23   :  { %449 = vmatpush.xpose.msk.msra.mxu1 %vm71_vm0, %v38_v24 }
  0x25   :  { %469 = vmatpush.xpose.msk.msra.mxu2 %vm71_vm0, %v257_v32 }
  0x26   :  { %430 = vmatpush.xpose.msk.msra.mxu0 %vm71_vm0, %v57_v27  ;;  %487 = vmatpush.xpose.msk.msra.mxu3 %vm71_vm0, %v57_v27 }
  0x27   :  { %450 = vmatpush.xpose.msk.msra.mxu1 %vm71_vm0, %v37_v28 }
  0x29   :  { %470 = vmatpush.xpose.msk.msra.mxu2 %vm71_vm0, %v256_v37 }
  0x2a   :  { %431 = vmatpush.xpose.msk.msra.mxu0 %vm71_vm0, %v56_v30  ;;  %488 = vmatpush.xpose.msk.msra.mxu3 %vm71_vm0, %v56_v30 }
  0x2b   :  { %451 = vmatpush.xpose.msk.msra.mxu1 %vm71_vm0, %v36_v31 }
  0x2d   :  { %471 = vmatpush.xpose.msk.msra.mxu2 %vm71_vm0, %v255_v40 }
  0x2e   :  { %432 = vmatpush.xpose.msk.msra.mxu0 %vm71_vm0, %v55_v35  ;;  %489 = vmatpush.xpose.msk.msra.mxu3 %vm71_vm0, %v55_v35 }
  0x2f   :  { %452 = vmatpush.xpose.msk.msra.mxu1 %vm71_vm0, %v35_v36 }
  0x31   :  { %472 = vmatpush.xpose.msk.msra.mxu2 %vm71_vm0, %v254_v45 }
  0x32   :  { %433 = vmatpush.xpose.msk.msra.mxu0 %vm71_vm0, %v54_v38  ;;  %490 = vmatpush.xpose.msk.msra.mxu3 %vm71_vm0, %v54_v38 }
  0x33   :  { %453 = vmatpush.xpose.msk.msra.mxu1 %vm71_vm0, %v34_v39 }
  0x35   :  { %473 = vmatpush.xpose.msk.msra.mxu2 %vm71_vm0, %v253_v48 }
  0x36   :  { %434 = vmatpush.xpose.msk.msra.mxu0 %vm71_vm0, %v53_v43  ;;  %491 = vmatpush.xpose.msk.msra.mxu3 %vm71_vm0, %v53_v43 }
  0x37   :  { %454 = vmatpush.xpose.msk.msra.mxu1 %vm71_vm0, %v33_v44 }
  0x39   :  { %474 = vmatpush.xpose.msk.msra.mxu2 %vm71_vm0, %v252_v54 }
  0x3a   :  { %435 = vmatpush.xpose.msk.msra.mxu0 %vm71_vm0, %v52_v46  ;;  %492 = vmatpush.xpose.msk.msra.mxu3 %vm71_vm0, %v52_v46 }
  0x3b   :  { %455 = vmatpush.xpose.msk.msra.mxu1 %vm71_vm0, %v32_v47 }
  0x3d   :  { %475 = vmatpush.xpose.msk.msra.mxu2 %vm71_vm0, %v251_v58 }
  0x3e   :  { %436 = vmatpush.xpose.msk.msra.mxu0 %vm71_vm0, %v51_v52  ;;  %493 = vmatpush.xpose.msk.msra.mxu3 %vm71_vm0, %v51_v52 }
  0x3f   :  { %456 = vmatpush.xpose.msk.msra.mxu1 %vm71_vm0, %v31_v53 }
  0x41   :  { %437 = vmatmul.msk.f32.vlgmr.msra.gmra.mxu0 %vm71_vm0, %v67_v55  ;;  %438 = vmatmul.msk.f32.vlgmr.msra.gmra.mxu3 %vm71_vm0, %v68_v57 }
  0x42   :  { %457 = vmatmul.msk.f32.vlgmr.msra.gmra.mxu1 %vm71_vm0, %v47_v56  ;;  %476 = vmatpush.xpose.msk.msra.mxu2 %vm71_vm0, %v250_v60 }
  0x45   :  { %477 = vmatmul.msk.f32.vlgmr.msra.gmra.mxu2 %vm71_vm0, %v335_v63 }
  0x49   :  { %439 = vmatmul.msk.f32.gmra.mxu3 %vm71_vm0, %v69_v62 }
  0x4a   :  { %458 = vmatmul.msk.f32.gmra.mxu1 %vm71_vm0, %v48_v61 }
  0x51   :  { %440 = vmatmul.msk.f32.gmra.mxu3 %vm71_vm0, %v70_v2 }
  0x52   :  { %459 = vmatmul.msk.f32.gmra.mxu1 %vm71_vm0, %v49_v1 }
  0x5a   :  { %460 = vmatmul.msk.f32.gmra.mxu1 %vm71_vm0, %v50_v3 }
  0x67   :  { %v305_v11 = vpop.permute.xlu2 %304 }
  0x6f   :  { %v310_v25 = vpop.permute.xlu2 %309 }
  0x77   :  { %v412_v44 = vpop.permute.xlu2 %411 }
  0x78   :  { %v414_v47 = vperm.slane %v412_v44, 0 }
  0x7a   :  { %v273_v5 = vpop.permute.xlu0 %272 }
  0x7d   :  { %v283_v8 = vpop.permute.xlu1 %282 }
  0x82   :  { %v278_v14 = vpop.permute.xlu0 %277 }
  0x85   :  { %v288_v20 = vpop.permute.xlu1 %287 }
  0x8a   :  { %v315_v29 = vpop.permute.xlu0 %314 }
  0x8d   :  { %v320_v35 = vpop.permute.xlu1 %319 }
  0xbe   :  { %v149_v9 = vpop.f32.mrf.mxu0 }
  0xbf   :  { %v238_v4 = vpop.f32.mrf.mxu1 }
  0xc0   :  { %v239_v12 = vadd.f32 %v238_v4, %v149_v9 }
  0xc2   :  { %v290_v18 = vadd.f32 %v273_v5, %v239_v12 }
  0xc4   :  { %v152_v6 = vpop.f32.mrf.mxu3  ;;  %v294_v22 = vmax.f32 %v290_v18, 0.0 }
  0xc6   :  { %v322_v30 = vmul.f32 %v305_v11, %v294_v22 }
  0xc7   :  { %v241_v7 = vpop.f32.mrf.mxu1 }
  0xc8   :  { %v242_v10 = vadd.f32 %v241_v7, %v152_v6  ;;  %v404_v45 = vpop.f32.mrf.mxu2 }
  0xca   :  { %v291_v16 = vadd.f32 %v278_v14, %v242_v10 }
  0xcc   :  { %v155_v13 = vpop.f32.mrf.mxu3  ;;  %v295_v21 = vmax.f32 %v291_v16, 0.0 }
  0xce   :  { %v323_v27 = vmul.f32 %v310_v25, %v295_v21 }
  0xcf   :  { %v244_v15 = vpop.f32.mrf.mxu1 }
  0xd0   :  { %v245_v17 = vadd.f32 %v244_v15, %v155_v13  ;;  %v326_v33 = vadd.f32 %v323_v27, %v322_v30 }
  0xd2   :  { %v292_v19 = vadd.f32 %v283_v8, %v245_v17 }
  0xd4   :  { %v296_v23 = vmax.f32 %v292_v19, 0.0  ;;  %v158_v24 = vpop.f32.mrf.mxu3 }
  0xd6   :  { %v324_v31 = vmul.f32 %v315_v29, %v296_v23 }
  0xd7   :  { %v247_v26 = vpop.f32.mrf.mxu1 }
  0xd8   :  { %v248_v28 = vadd.f32 %v247_v26, %v158_v24  ;;  %v327_v36 = vadd.f32 %v326_v33, %v324_v31 }
  0xda   :  { %v293_v32 = vadd.f32 %v288_v20, %v248_v28 }
  0xdc   :  { %v297_v34 = vmax.f32 %v293_v32, 0.0 }
  0xde   :  { %v325_v37 = vmul.f32 %v320_v35, %v297_v34 }
  0xe0   :  { %v328_v38 = vadd.f32 %v327_v36, %v325_v37 }
  0xe2   :  { %v329_v39 = vrot.slane %v328_v38, 4 }
  0xe4   :  { %v330_v40 = vadd.f32 %v329_v39, %v328_v38 }
  0xe6   :  { %v331_v41 = vrot.slane %v330_v40, 2 }
  0xe8   :  { %v332_v42 = vadd.f32 %v331_v41, %v330_v40 }
  0xea   :  { %v333_v43 = vrot.slane %v332_v42, 1 }
  0xec   :  { %v334_v46 = vadd.f32 %v333_v43, %v332_v42 }
  0xee   :  { %v407_v48 = vadd.f32 %v404_v45, %v334_v46 }
  0xf0   :  { %v415_v49 = vadd.f32 %v414_v47, %v407_v48 }
  0xf2   :  { %416 = vst [vmem:[%s778_s8] sm:$0x1] %v415_v49 }

</bundles_post_ra>
